<compile_context>
chip_gen: v5e
topology: v5e:2x2
jax: 0.10.0
libtpu: 0.0.40
codegen_flags: <defaults>
</compile_context>

<pallas_src>
import jax
import jax.numpy as jnp
from jax.experimental import pallas as pl
from jax.experimental.pallas import tpu as pltpu

EPS = 1e-12                              # F.normalize default eps
_TRANS_B = (((1,), (1,)), ((), ()))      # A @ B^T contraction for dot_general


def cosine_gate_kernel(xa_ref, w_ref, sim_ref, out_ref):
    # xa_ref:  VMEM (tm, K+1)  bf16/f32 -- x tile with a trailing ones column
    # w_ref:   VMEM (K+1, P)   bf16/f32 -- projector weight, bias as last row
    # sim_ref: VMEM (E, P)     f32      -- col-normalized, temp-scaled sim^T
    # out_ref: VMEM (E, tm)    f32      -- transposed (lane-dense) logits

    # cosine_projector(x) = (x | 1) @ [[W],[b]]: one bf16 MXU pass, f32 accum.
    proj = jnp.dot(xa_ref[...], w_ref[...],
                   preferred_element_type=jnp.float32)               # [tm, P]

    # Row sum-of-squares, produced directly as [1, tm] via a ones-row MXU
    # contraction (no [tm,1]->[1,tm] relayout needed).
    sq = proj * proj
    ones_row = jnp.ones((1, sq.shape[-1]), dtype=jnp.float32)
    sumsq_t = jax.lax.dot_general(ones_row, sq, _TRANS_B,
                                  preferred_element_type=jnp.float32)  # [1, tm]

    # 1 / max(||proj||, EPS) == rsqrt(max(sum(proj^2), EPS^2))   (EUP slot)
    inv_t = jax.lax.rsqrt(jnp.maximum(sumsq_t, jnp.float32(EPS * EPS)))

    # Transposed logits [E, tm]; sim is already column-normalized and scaled
    # by exp(clamp(temperature)).  The per-token inverse norm is folded in
    # after the matmul (linear map x per-row scalar), touching only E*tm elems.
    logits_t = jax.lax.dot_general(sim_ref[...], proj, _TRANS_B,
                                   preferred_element_type=jnp.float32)  # [E, tm]
    out_ref[...] = (logits_t * inv_t).astype(out_ref.dtype)


def _round_up(x, m):
    return ((x + m - 1) // m) * m


def cosine_topk_gate_logits(x, w, b, sim_matrix, temperature, *, clamp_max,
                            tm_target=1024, min_steps=4, use_bf16=True,
                            return_transposed=False):
    """x: [N, model_dim], w: [model_dim, proj_dim] (transposed Linear weight),
    b: [proj_dim], sim_matrix: [proj_dim, num_experts], temperature: [1] (log).
    Returns logits [N, num_experts] (module layout), or the lane-dense
    [num_experts, N] slab when return_transposed=True."""
    n, model_dim = x.shape
    proj_dim, num_experts = sim_matrix.shape
    k1 = model_dim + 1

    # --- grid-invariant preprocessing (hoisted out of the kernel) -----------
    # F.normalize(sim_matrix, dim=0) and exp(clamp(temperature, clamp_max))
    # folded once into a single tiny [E, P] operand (consumed transposed so
    # the second matmul writes lane-dense [E, tm] blocks).
    sim_f32 = sim_matrix.astype(jnp.float32)
    col_norm = jnp.sqrt(jnp.sum(sim_f32 * sim_f32, axis=0, keepdims=True))
    sim_n = sim_f32 / jnp.maximum(col_norm, jnp.float32(EPS))
    scale = jnp.exp(jnp.minimum(temperature.astype(jnp.float32).reshape(()),
                                jnp.float32(clamp_max)))
    sim_t = (sim_n * scale).T                                      # [E, P] f32

    # Bias folded into the projection matmul: (x | 1) @ [[W], [b]].
    mxu_dtype = jnp.bfloat16 if use_bf16 else jnp.float32
    x_aug = jnp.concatenate(
        [x.astype(jnp.float32), jnp.ones((n, 1), jnp.float32)], axis=1
    ).astype(mxu_dtype)                                            # [N, K+1]
    w_ext = jnp.concatenate(
        [w.astype(jnp.float32), b.astype(jnp.float32).reshape(1, proj_dim)],
        axis=0).astype(mxu_dtype)                                  # [K+1, P]

    # --- tile / grid selection ----------------------------------------------
    # Big tiles amortize the ~0.35us per-grid-step overhead; an even grid of
    # >= 4 "parallel" steps keeps both TensorCores busy on megacore parts.
    if n >= min_steps * 128:
        steps = max(min_steps, pl.cdiv(n, tm_target))
        if steps % 2:
            steps += 1
        tm = _round_up(pl.cdiv(n, steps), 128)    # lane-dense output blocks
    else:
        steps = 1
        tm = _round_up(n, 8)                      # tiny input: one full tile
    n_pad = steps * tm
    if n_pad != n:                                # ragged N: zero-pad + slice
        x_aug = jnp.pad(x_aug, ((0, n_pad - n), (0, 0)))

    itemsize = jnp.dtype(mxu_dtype).itemsize
    cost = pl.CostEstimate(
        flops=2 * n_pad * proj_dim * (k1 + num_experts + 1),
        transcendentals=n_pad,                    # one rsqrt per token
        bytes_accessed=(n_pad * k1 * itemsize + k1 * proj_dim * itemsize
                        + num_experts * proj_dim * 4 + num_experts * n_pad * 4),
    )

    # NOTE(perf): w_ext / sim_t have constant index maps (fetched once).
    # pl.Buffered(1) on them would shave ~0.2 MiB of VMEM; skipped as a
    # low-value / portability trade-off per the review's own priority.
    out_t = pl.pallas_call(
        cosine_gate_kernel,
        out_shape=jax.ShapeDtypeStruct((num_experts, n_pad), jnp.float32),
        grid_spec=pltpu.PrefetchScalarGridSpec(
            num_scalar_prefetch=0,
            grid=(steps,),
            in_specs=[
                pl.BlockSpec((tm, k1), lambda i: (i, 0)),                 # x|1
                pl.BlockSpec((k1, proj_dim), lambda i: (0, 0)),           # W|b
                pl.BlockSpec((num_experts, proj_dim), lambda i: (0, 0)),  # sim^T
            ],
            out_specs=pl.BlockSpec((num_experts, tm), lambda i: (0, i)),
        ),
        compiler_params=pltpu.CompilerParams(
            dimension_semantics=("parallel",)),
        cost_estimate=cost,
    )(x_aug, w_ext, sim_t)

    out_t = out_t[:, :n]
    if return_transposed:
        return out_t       # [E, N] lane-dense slab (ideal for a fused top-k)
    return out_t.T         # module layout [N, E]


def reference_logits(x, w, b, sim_matrix, temperature, clamp_max):
    hi = jax.lax.Precision.HIGHEST
    proj = (jnp.dot(x.astype(jnp.float32), w.astype(jnp.float32), precision=hi)
            + b.astype(jnp.float32))
    proj_n = proj / jnp.maximum(
        jnp.linalg.norm(proj, axis=1, keepdims=True), EPS)
    sim_n = sim_matrix / jnp.maximum(
        jnp.linalg.norm(sim_matrix, axis=0, keepdims=True), EPS)
    scale = jnp.exp(jnp.minimum(temperature, clamp_max))
    return jnp.dot(proj_n, sim_n, precision=hi) * scale


if __name__ == "__main__":
    # Module hyper-parameters (synthetic, deterministic init).
    model_dim = 32
    proj_dim = 256
    num_global_experts = 8
    init_t = 0.5
    clamp_max = float(jnp.log(1.0 / 0.01))       # log(100)
    n_tokens = 512                               # -> grid of 4 parallel tiles

    key = jax.random.PRNGKey(0)
    kx, kw, kb, ks = jax.random.split(key, 4)

    x = jax.random.normal(kx, (n_tokens, model_dim), dtype=jnp.float32)

    # nn.Linear(model_dim, proj_dim): weight [proj_dim, model_dim] -> store W^T.
    bound = 1.0 / (model_dim ** 0.5)
    w_linear = jax.random.uniform(kw, (proj_dim, model_dim),
                                  minval=-bound, maxval=bound, dtype=jnp.float32)
    b_linear = jax.random.uniform(kb, (proj_dim,),
                                  minval=-bound, maxval=bound, dtype=jnp.float32)
    w_t = w_linear.T                             # [model_dim, proj_dim]

    # sim_matrix ~ Normal(0, 0.01), temperature = log(1/init_t)
    sim_matrix = 0.01 * jax.random.normal(ks, (proj_dim, num_global_experts),
                                          dtype=jnp.float32)
    temperature = jnp.log(jnp.full((1,), 1.0 / init_t, dtype=jnp.float32))

    logits = cosine_topk_gate_logits(x, w_t, b_linear, sim_matrix, temperature,
                                     clamp_max=clamp_max)
    logits = jax.block_until_ready(logits)
    assert logits.shape == (n_tokens, num_global_experts)

    # Validate against an f32 reference fed the SAME bf16-rounded operands
    # (the kernel deliberately feeds bf16 to the MXU per the perf review;
    # normalize / temperature math itself stays f32).
    xq = x.astype(jnp.bfloat16).astype(jnp.float32)
    wq = w_t.astype(jnp.bfloat16).astype(jnp.float32)
    bq = b_linear.astype(jnp.bfloat16).astype(jnp.float32)
    ref = reference_logits(xq, wq, bq, sim_matrix, temperature[0], clamp_max)
    err = float(jnp.max(jnp.abs(logits - ref)))
    assert jnp.allclose(logits, ref, atol=1e-3, rtol=1e-3), f"mismatch: {err}"

    print("KERNEL_OK")
</pallas_src>

<mosaic_0001>
module attributes {stable_mosaic.version = 11 : i64} {
  func.func @cosine_gate_kernel(%arg0: i32, %arg1: memref<128x33xbf16, #tpu.memory_space<vmem>>, %arg2: memref<33x256xbf16, #tpu.memory_space<vmem>>, %arg3: memref<8x256xf32, #tpu.memory_space<vmem>>, %arg4: memref<8x128xf32, #tpu.memory_space<vmem>>) attributes {dimension_semantics = [#tpu.dimension_semantics<parallel>], iteration_bounds = array<i64: 4>, scalar_prefetch = 0 : i64, scratch_operands = 0 : i64, tpu.core_type = #tpu.core_type<tc>, window_params = [{transform_indices = @transform_0, window_bounds = array<i64: 128, 33>}, {pipeline_mode = #tpu.pipeline_mode<synchronous>, transform_indices = @transform_1, window_bounds = array<i64: 33, 256>}, {pipeline_mode = #tpu.pipeline_mode<synchronous>, transform_indices = @transform_2, window_bounds = array<i64: 8, 256>}, {transform_indices = @transform_3, window_bounds = array<i64: 8, 128>}]} {
    %c0 = arith.constant 0 : index
    %c0_0 = arith.constant 0 : index
    %0 = vector.load %arg1[%c0, %c0_0] : memref<128x33xbf16, #tpu.memory_space<vmem>>, vector<128x33xbf16>
    %c0_1 = arith.constant 0 : index
    %c0_2 = arith.constant 0 : index
    %1 = vector.load %arg2[%c0_1, %c0_2] : memref<33x256xbf16, #tpu.memory_space<vmem>>, vector<33x256xbf16>
    %cst = arith.constant dense<0.000000e+00> : vector<128x256xf32>
    %2 = tpu.matmul %0, %1, %cst {dimension_numbers = #tpu.dot_dimension_numbers<[1], [0], [0], [1], [0, 0, 1, 1], [], []>} : vector<128x33xbf16>, vector<33x256xbf16>, vector<128x256xf32> -> vector<128x256xf32>
    %3 = arith.mulf %2, %2 : vector<128x256xf32>
    %cst_3 = arith.constant 1.000000e+00 : f32
    %4 = vector.broadcast %cst_3 : f32 to vector<1x256xf32>
    %cst_4 = arith.constant dense<0.000000e+00> : vector<1x128xf32>
    %5 = tpu.matmul %4, %3, %cst_4 {dimension_numbers = #tpu.dot_dimension_numbers<[1], [1], [0], [0], [0, 0, 1, 0], [], []>} : vector<1x256xf32>, vector<128x256xf32>, vector<1x128xf32> -> vector<1x128xf32>
    %cst_5 = arith.constant 1.000000e-24 : f32
    %6 = vector.broadcast %cst_5 : f32 to vector<1x128xf32>
    %7 = arith.maximumf %5, %6 : vector<1x128xf32>
    %8 = math.rsqrt %7 : vector<1x128xf32>
    %c0_6 = arith.constant 0 : index
    %c0_7 = arith.constant 0 : index
    %9 = vector.load %arg3[%c0_6, %c0_7] : memref<8x256xf32, #tpu.memory_space<vmem>>, vector<8x256xf32>
    %cst_8 = arith.constant dense<0.000000e+00> : vector<8x128xf32>
    %10 = tpu.matmul %9, %2, %cst_8 {dimension_numbers = #tpu.dot_dimension_numbers<[1], [1], [0], [0], [0, 0, 1, 0], [], []>} : vector<8x256xf32>, vector<128x256xf32>, vector<8x128xf32> -> vector<8x128xf32>
    %11 = vector.broadcast %8 : vector<1x128xf32> to vector<8x128xf32>
    %12 = arith.mulf %10, %11 : vector<8x128xf32>
    %c0_9 = arith.constant 0 : index
    %c0_10 = arith.constant 0 : index
    %13 = vector.load %arg4[%c0_9, %c0_10] : memref<8x128xf32, #tpu.memory_space<vmem>>, vector<8x128xf32>
    tpu.vector_store %arg4[%c0_9, %c0_10], %12 {strides = array<i32>} : memref<8x128xf32, #tpu.memory_space<vmem>>, vector<8x128xf32>,
    return
  }
  func.func @transform_0(%arg0: i32) -> (i32, i32) {
    %c0_i32 = arith.constant 0 : i32
    %c0_i32_0 = arith.constant 0 : i32
    return %arg0, %c0_i32 : i32, i32
  }
  func.func @transform_1(%arg0: i32) -> (i32, i32) {
    %c0_i32 = arith.constant 0 : i32
    %c0_i32_0 = arith.constant 0 : i32
    %c0_i32_1 = arith.constant 0 : i32
    return %c0_i32, %c0_i32_0 : i32, i32
  }
  func.func @transform_2(%arg0: i32) -> (i32, i32) {
    %c0_i32 = arith.constant 0 : i32
    %c0_i32_0 = arith.constant 0 : i32
    %c0_i32_1 = arith.constant 0 : i32
    return %c0_i32, %c0_i32_0 : i32, i32
  }
  func.func @transform_3(%arg0: i32) -> (i32, i32) {
    %c0_i32 = arith.constant 0 : i32
    %c0_i32_0 = arith.constant 0 : i32
    return %c0_i32, %arg0 : i32, i32
  }
}

</mosaic_0001>

<bundles_post_ra>
// kernel: tpu_custom_call.1
= control target key start
LH: loop header
LB: loop body
LE: loop exit
PB: predicated region body
PF: predicated region fallthrough
CT: control target
= control target key end

     0   :  { %8 = vsyncpa [#allocation3], 0  ;;  %s1102_s0 = inlined_call_operand.vmem [shape: bf16[512,33], index: 0, kind: input, shape index: {}]   ;;  %s1103_s1 = inlined_call_operand.vmem [shape: bf16[33,256], index: 1, kind: input, shape index: {}]   ;;  %s1104_s2 = inlined_call_operand.vmem [shape: f32[8,256], index: 2, kind: input, shape index: {}]   ;;  %s1105_s3 = inlined_call_operand.hbm [shape: f32[8,512], index: 3, kind: output, shape index: {}]  }
   0x1   :  { %10 = vsyncpa [#allocation3 + $0x1], 0  ;;  %s809_s12 = smov 0   ;;  %s811_s13 = smov 0  }
   0x2   :  { %s813_s14 = smov 0   ;;  %s815_s15 = smov 0  }
   0x3 LB: > { %s830_s16 = sadd.s32 4294967295, %s785_s15   ;;  %s593_s17 = sadd.s32 4294967294, %s785_s15   ;;  %s785_s15 = sphi %s815_s15, %s1111_s15   ;;  %s781_s14 = sphi %s813_s14, %s1110_s14   ;;  %s777_s13 = sphi %s811_s13, %s1109_s13   ;;  %s773_s12 = sphi %s809_s12, %s1108_s12  }
   0x4   : > { %s834_s18 = sadd.s32 1, %s785_s15   ;;  %s91_s19 = sadd.s32 1, %s781_s14 }
   0x5   : > { %s88_s20 = ssub.s32 %s785_s15, %s834_s18  ;;  %p101_p0 = scmp.ne.s32.totalorder %s781_s14, %s777_s13 }
   0x6   : > { %p89_p1 = scmp.eq.s32.totalorder %s88_s20, 0  ;;  %p102_p2 = scmp.eq.s32.totalorder %s830_s16, 3 }
   0x7   : > { %p107_p3 = scmp.ne.s32.totalorder %s777_s13, %s773_s12  ;;  %p108_p4 = scmp.eq.s32.totalorder %s593_s17, 3 }
   0x8   : > { %s845_s21 = scalar_select %p89_p1, %s781_s14, %s91_s19  }
   0x9   : > { %p847_p5 = por %p102_p2, %p101_p0  ;;  %p851_p6 = por %p108_p4, %p107_p3 }
   0xa   : > { %p596_p7 = scmp.ge.s32.totalorder %s785_s15, 1  ;;  %p141_p8 = scmp.lt.s32.totalorder %s785_s15, 5 }
   0xc   : > { %p142_p9 = pnand %p596_p7, %p141_p8 }
   0xd   : > { %s598_s26 = sshll.u32 (!%p142_p9), %s830_s16, 4  ;;  %s162_s6 = sand.u32 (!%p142_p9), 1, %s777_s13  }
   0xe   : > { %145 = sbr.rel (%p142_p9) target bundleno = 551 (0x227), region = 32  ;;  %p166_p10 = scmp.lt.s32.totalorder (!%p142_p9), %s598_s26, 63 }
   0xf   : > { %s597_s7 = sshll.u32 (!%p142_p9), %s162_s6, 3  ;;  %s665_s8 = sshll.u32 (!%p142_p9), %s830_s16, 3 }
  0x10   : > { %s529_s11 = scalar_lea.hbm (!%p142_p9), %s1105_s3, %s665_s8  ;;  %s164_s17 = scalar_lea.vmem (!%p142_p9), [#allocation2], %s597_s7 }
  0x11   : > { %s531_s19 = sshll.u32 (!%p142_p9), %s164_s17, 4  ;;  %s533_s20 = sshll.u32 (!%p142_p9), %s529_s11, 4  ;;  %s532_s19 = int_to_ptr.vmem [resolvable:$true] %s531_s19  ;;  %s534_s20 = int_to_ptr.hbm [resolvable:$true] %s533_s20 }
  0x12   : > { %s519_s24 = scalar_lea.sflag (!%p142_p9), [#allocation3], %s162_s6  ;;  %s737_s16 = sshra.s32 (!%p142_p9), %s534_s20, 4  ;;  %s738_s16 = int_to_ptr.hbm [resolvable:$true] %s737_s16 }
  0x13   : > { %v192_v0 = vld [vmem:[%s1103_s1 + $0x20] sm:$0x11]  ;;  %vm283_vm0 = vcmask 1040384   ;;  %v787_v3 = vmov 0   ;;  %v642_v7 = vld [vmem:[%s1103_s1 + $0x10] sm:$0xf]  ;;  %p744_p0 = scmp.lt.s32.totalorder %s738_s16, %s1105_s3 }
  0x14   : > { %v246_v1 = vunpack.c.l.b16 %v192_v0  ;;  %v247_v2 = vunpack.c.h.b16 %v192_v0  ;;  %v285_v4 = vsel %vm283_vm0, 65535, %v787_v3  ;;  %v679_v8 = vld [vmem:[%s1103_s1 + $0x14] sm:$0xf0]  ;;  %v678_v9 = vld [vmem:[%s1103_s1 + $0x14] sm:$0xf]  ;;  %s1113_s26 = smov (!%p166_p10, %s598_s26), 63 }
  0x15   : > { %v644_v10 = vld [vmem:[%s1103_s1 + $0x18] sm:$0xf0]  ;;  %v643_v13 = vor.u32 %v679_v8, %v642_v7  ;;  %v634_v15 = vld [vmem:[%s1103_s1] sm:$0xf]  ;;  %v677_v16 = vld [vmem:[%s1103_s1 + $0x4] sm:$0xf0] }
  0x16   : > { %v252_v5 = vpack.c.b16 %v246_v1, %v246_v1  ;;  %v253_v6 = vpack.c.b16 %v247_v2, %v247_v2  ;;  %v647_v14 = vor.u32 %v678_v9, %v644_v10  ;;  %v676_v17 = vld [vmem:[%s1103_s1 + $0x4] sm:$0xf]  ;;  %v636_v18 = vld [vmem:[%s1103_s1 + $0x8] sm:$0xf0]  ;;  %s599_s25 = sshll.u32 %s1113_s26, 2  ;;  %v635_v19 = vor.u32 %v677_v16, %v634_v15 }
  0x17   : > { %v639_v20 = vor.u32 %v676_v17, %v636_v18  ;;  %s169_s29 = scalar_lea.vmem %s1102_s0, %s599_s25  ;;  %vm258_vm1 = vcmask 269312   ;;  %s739_s25 = scalar_lea.hbm %s738_s16, 8 }
  0x18   : > { %v287_v11 = vand.u32 %v285_v4, %v252_v5  ;;  %v290_v12 = vand.u32 %v285_v4, %v253_v6  ;;  %v668_v21 = vld [vmem:[%s169_s29] sm:$0xff]  ;;  %v669_v22 = vld [vmem:[%s169_s29 + $0x8] sm:$0xff]  ;;  %v670_v23 = vld [vmem:[%s169_s29 + $0x10] sm:$0xff]  ;;  %p740_p11 = scmp.ne.s32.totalorder %s738_s16, %s739_s25 }
  0x19   : > { %v671_v24 = vld [vmem:[%s169_s29 + $0x18] sm:$0xff]  ;;  %v672_v25 = vld [vmem:[%s169_s29 + $0x20] sm:$0xff]  ;;  %v673_v26 = vld [vmem:[%s169_s29 + $0x28] sm:$0xff] }
  0x1a   : > { %297 = vmatpush.bf16.msra.mxu0 %v287_v11  ;;  %346 = vmatpush.bf16.msra.mxu1 %v290_v12  ;;  %v674_v27 = vld [vmem:[%s169_s29 + $0x30] sm:$0xff]  ;;  %v675_v28 = vld [vmem:[%s169_s29 + $0x38] sm:$0xff]  ;;  %p741_p12 = pnand %p740_p11, %p847_p5  ;;  %s743_s29 = scalar_lea.hbm %s1105_s3, 32 }
  0x1b   : > { %p745_p1 = scmp.lt.s32.totalorder %s743_s29, %s739_s25 }
  0x1c   : > { %p742_p13 = pneg %p741_p12 }
  0x1d   : > { %p746_p2 = por %p745_p1, %p744_p0 }
  0x1e   : > { %298 = vmatpush.bf16.msra.mxu0 %v643_v13  ;;  %347 = vmatpush.bf16.msra.mxu1 %v647_v14 }
  0x1f   : > { %p747_p3 = pnand %p746_p2, %p742_p13 }
  0x22   : > { %299 = vmatpush.bf16.msra.mxu0 %v635_v19  ;;  %348 = vmatpush.bf16.msra.mxu1 %v639_v20 }
  0x25   : > { %648 = vmatmul.msk.bf16.vlgmr.msra.gmra.mxu0 %vm258_vm1, %v668_v21  ;;  %656 = vmatmul.msk.bf16.vlgmr.msra.gmra.mxu1 %vm258_vm1, %v668_v21 }
  0x35   : > { %649 = vmatmul.msk.bf16.gmra.mxu0 %vm258_vm1, %v669_v22  ;;  %657 = vmatmul.msk.bf16.gmra.mxu1 %vm258_vm1, %v669_v22 }
  0x45   : > { %650 = vmatmul.msk.bf16.gmra.mxu0 %vm258_vm1, %v670_v23  ;;  %658 = vmatmul.msk.bf16.gmra.mxu1 %vm258_vm1, %v670_v23 }
  0x55   : > { %651 = vmatmul.msk.bf16.gmra.mxu0 %vm258_vm1, %v671_v24  ;;  %659 = vmatmul.msk.bf16.gmra.mxu1 %vm258_vm1, %v671_v24 }
  0x65   : > { %652 = vmatmul.msk.bf16.gmra.mxu0 %vm258_vm1, %v672_v25  ;;  %660 = vmatmul.msk.bf16.gmra.mxu1 %vm258_vm1, %v672_v25 }
  0x75   : > { %653 = vmatmul.msk.bf16.gmra.mxu0 %vm258_vm1, %v673_v26  ;;  %661 = vmatmul.msk.bf16.gmra.mxu1 %vm258_vm1, %v673_v26 }
  0x85   : > { %654 = vmatmul.msk.bf16.gmra.mxu0 %vm258_vm1, %v674_v27  ;;  %662 = vmatmul.msk.bf16.gmra.mxu1 %vm258_vm1, %v674_v27 }
  0x95   : > { %655 = vmatmul.msk.bf16.gmra.mxu0 %vm258_vm1, %v675_v28  ;;  %663 = vmatmul.msk.bf16.gmra.mxu1 %vm258_vm1, %v675_v28 }
  0xa2   : > { %v904_v29 = vpop.f32.mrf.mxu0  ;;  %v906_v30 = vpop.f32.mrf.mxu1 }
  0xa3   : > { %v390_v27 = vmul.f32 %v904_v29, %v904_v29  ;;  %v391_v28 = vmul.f32 %v906_v30, %v906_v30 }
  0xaa   : > { %v908_v31 = vpop.f32.mrf.mxu0  ;;  %v910_v32 = vpop.f32.mrf.mxu1 }
  0xab   : > { %v392_v25 = vmul.f32 %v908_v31, %v908_v31  ;;  %v393_v26 = vmul.f32 %v910_v32, %v910_v32 }
  0xb2   : > { %v912_v33 = vpop.f32.mrf.mxu0  ;;  %v914_v34 = vpop.f32.mrf.mxu1 }
  0xb3   : > { %v394_v23 = vmul.f32 %v912_v33, %v912_v33  ;;  %v395_v24 = vmul.f32 %v914_v34, %v914_v34 }
  0xba   : > { %v916_v35 = vpop.f32.mrf.mxu0  ;;  %v918_v36 = vpop.f32.mrf.mxu1 }
  0xbb   : > { %v396_v21 = vmul.f32 %v916_v35, %v916_v35  ;;  %v397_v22 = vmul.f32 %v918_v36, %v918_v36 }
  0xc2   : > { %v920_v37 = vpop.f32.mrf.mxu0  ;;  %v922_v38 = vpop.f32.mrf.mxu1 }
  0xc3   : > { %v398_v19 = vmul.f32 %v920_v37, %v920_v37  ;;  %v399_v20 = vmul.f32 %v922_v38, %v922_v38 }
  0xca   : > { %v924_v39 = vpop.f32.mrf.mxu0  ;;  %v926_v40 = vpop.f32.mrf.mxu1 }
  0xcb   : > { %v400_v17 = vmul.f32 %v924_v39, %v924_v39  ;;  %v401_v18 = vmul.f32 %v926_v40, %v926_v40 }
  0xd2   : > { %v928_v41 = vpop.f32.mrf.mxu0  ;;  %v930_v42 = vpop.f32.mrf.mxu1 }
  0xd3   : > { %v402_v15 = vmul.f32 %v928_v41, %v928_v41  ;;  %v403_v16 = vmul.f32 %v930_v42, %v930_v42 }
  0xda   : > { %v932_v43 = vpop.f32.mrf.mxu0  ;;  %v934_v44 = vpop.f32.mrf.mxu1 }
  0xdb   : > { %v404_v13 = vmul.f32 %v932_v43, %v932_v43  ;;  %v405_v14 = vmul.f32 %v934_v44, %v934_v44 }
  0xe2   : > { %v936_v45 = vpop.f32.mrf.mxu0  ;;  %v938_v46 = vpop.f32.mrf.mxu1 }
  0xe3   : > { %v406_v11 = vmul.f32 %v936_v45, %v936_v45  ;;  %v407_v12 = vmul.f32 %v938_v46, %v938_v46 }
  0xea   : > { %v940_v47 = vpop.f32.mrf.mxu0  ;;  %v942_v48 = vpop.f32.mrf.mxu1 }
  0xeb   : > { %v408_v9 = vmul.f32 %v940_v47, %v940_v47  ;;  %v409_v10 = vmul.f32 %v942_v48, %v942_v48 }
  0xf2   : > { %v944_v49 = vpop.f32.mrf.mxu0  ;;  %v946_v50 = vpop.f32.mrf.mxu1 }
  0xf3   : > { %v410_v7 = vmul.f32 %v944_v49, %v944_v49  ;;  %v411_v8 = vmul.f32 %v946_v50, %v946_v50 }
  0xfa   : > { %v948_v51 = vpop.f32.mrf.mxu0  ;;  %v950_v52 = vpop.f32.mrf.mxu1 }
  0xfb   : > { %v412_v5 = vmul.f32 %v948_v51, %v948_v51  ;;  %v413_v6 = vmul.f32 %v950_v52, %v950_v52 }
 0x102   : > { %v952_v53 = vpop.f32.mrf.mxu0  ;;  %v954_v54 = vpop.f32.mrf.mxu1 }
 0x103   : > { %v414_v3 = vmul.f32 %v952_v53, %v952_v53  ;;  %v415_v4 = vmul.f32 %v954_v54, %v954_v54 }
 0x10a   : > { %v956_v55 = vpop.f32.mrf.mxu0  ;;  %v958_v56 = vpop.f32.mrf.mxu1 }
 0x10b   : > { %v416_v1 = vmul.f32 %v956_v55, %v956_v55  ;;  %v417_v2 = vmul.f32 %v958_v56, %v958_v56 }
 0x112   : > { %v960_v57 = vpop.f32.mrf.mxu0  ;;  %v962_v58 = vpop.f32.mrf.mxu1 }
 0x113   : > { %v418_v63 = vmul.f32 %v960_v57, %v960_v57  ;;  %v419_v0 = vmul.f32 %v962_v58, %v962_v58 }
 0x11a   : > { %v964_v59 = vpop.f32.mrf.mxu0  ;;  %v966_v60 = vpop.f32.mrf.mxu1 }
 0x11b   : > { %v420_v61 = vmul.f32 %v964_v59, %v964_v59  ;;  %v421_v62 = vmul.f32 %v966_v60, %v966_v60 }
 0x11d   : > { %422 = vmatpush.xpose.msra.mxu2 %v420_v61  ;;  %442 = vmatpush.xpose.msra.mxu3 %v421_v62  ;;  %v788_v61 = vmov 1.0  }
 0x121   : > { %423 = vmatpush.xpose.msra.mxu2 %v418_v63  ;;  %443 = vmatpush.xpose.msra.mxu3 %v419_v0 }
 0x125   : > { %424 = vmatpush.xpose.msra.mxu2 %v416_v1  ;;  %444 = vmatpush.xpose.msra.mxu3 %v417_v2 }
 0x129   : > { %425 = vmatpush.xpose.msra.mxu2 %v414_v3  ;;  %445 = vmatpush.xpose.msra.mxu3 %v415_v4 }
 0x12d   : > { %426 = vmatpush.xpose.msra.mxu2 %v412_v5  ;;  %446 = vmatpush.xpose.msra.mxu3 %v413_v6 }
 0x131   : > { %427 = vmatpush.xpose.msra.mxu2 %v410_v7  ;;  %447 = vmatpush.xpose.msra.mxu3 %v411_v8 }
 0x135   : > { %428 = vmatpush.xpose.msra.mxu2 %v408_v9  ;;  %448 = vmatpush.xpose.msra.mxu3 %v409_v10 }
 0x139   : > { %429 = vmatpush.xpose.msra.mxu2 %v406_v11  ;;  %449 = vmatpush.xpose.msra.mxu3 %v407_v12 }
 0x13d   : > { %430 = vmatpush.xpose.msra.mxu2 %v404_v13  ;;  %450 = vmatpush.xpose.msra.mxu3 %v405_v14 }
 0x141   : > { %431 = vmatpush.xpose.msra.mxu2 %v402_v15  ;;  %451 = vmatpush.xpose.msra.mxu3 %v403_v16 }
 0x145   : > { %432 = vmatpush.xpose.msra.mxu2 %v400_v17  ;;  %452 = vmatpush.xpose.msra.mxu3 %v401_v18 }
 0x149   : > { %433 = vmatpush.xpose.msra.mxu2 %v398_v19  ;;  %453 = vmatpush.xpose.msra.mxu3 %v399_v20 }
 0x14d   : > { %434 = vmatpush.xpose.msra.mxu2 %v396_v21  ;;  %454 = vmatpush.xpose.msra.mxu3 %v397_v22 }
 0x151   : > { %435 = vmatpush.xpose.msra.mxu2 %v394_v23  ;;  %455 = vmatpush.xpose.msra.mxu3 %v395_v24 }
 0x155   : > { %436 = vmatpush.xpose.msra.mxu2 %v392_v25  ;;  %456 = vmatpush.xpose.msra.mxu3 %v393_v26 }
 0x159   : > { %437 = vmatpush.xpose.msra.mxu2 %v390_v27  ;;  %457 = vmatpush.xpose.msra.mxu3 %v391_v28 }
 0x15c   : > { %438 = vmatmul.f32.vlgmr.msra.gmra.mxu2 %v788_v61  ;;  %458 = vmatmul.f32.vlgmr.msra.gmra.mxu3 %v788_v61 }
 0x15d   : > { %475 = vmatpush.xpose.msrb.mxu2 %v964_v59  ;;  %495 = vmatpush.xpose.msrb.mxu3 %v966_v60 }
 0x161   : > { %476 = vmatpush.xpose.msrb.mxu2 %v960_v57  ;;  %496 = vmatpush.xpose.msrb.mxu3 %v962_v58 }
 0x165   : > { %477 = vmatpush.xpose.msrb.mxu2 %v956_v55  ;;  %497 = vmatpush.xpose.msrb.mxu3 %v958_v56 }
 0x169   : > { %478 = vmatpush.xpose.msrb.mxu2 %v952_v53  ;;  %498 = vmatpush.xpose.msrb.mxu3 %v954_v54 }
 0x16d   : > { %479 = vmatpush.xpose.msrb.mxu2 %v948_v51  ;;  %499 = vmatpush.xpose.msrb.mxu3 %v950_v52 }
 0x171   : > { %480 = vmatpush.xpose.msrb.mxu2 %v944_v49  ;;  %500 = vmatpush.xpose.msrb.mxu3 %v946_v50 }
 0x175   : > { %481 = vmatpush.xpose.msrb.mxu2 %v940_v47  ;;  %501 = vmatpush.xpose.msrb.mxu3 %v942_v48 }
 0x179   : > { %482 = vmatpush.xpose.msrb.mxu2 %v936_v45  ;;  %502 = vmatpush.xpose.msrb.mxu3 %v938_v46 }
 0x17d   : > { %483 = vmatpush.xpose.msrb.mxu2 %v932_v43  ;;  %503 = vmatpush.xpose.msrb.mxu3 %v934_v44 }
 0x181   : > { %484 = vmatpush.xpose.msrb.mxu2 %v928_v41  ;;  %504 = vmatpush.xpose.msrb.mxu3 %v930_v42 }
 0x185   : > { %485 = vmatpush.xpose.msrb.mxu2 %v924_v39  ;;  %505 = vmatpush.xpose.msrb.mxu3 %v926_v40 }
 0x189   : > { %486 = vmatpush.xpose.msrb.mxu2 %v920_v37  ;;  %506 = vmatpush.xpose.msrb.mxu3 %v922_v38  ;;  %v473_v37 = vld [vmem:[%s1104_s2] sm:$0xff] }
 0x18d   : > { %487 = vmatpush.xpose.msrb.mxu2 %v916_v35  ;;  %507 = vmatpush.xpose.msrb.mxu3 %v918_v36  ;;  %v474_v35 = vld [vmem:[%s1104_s2 + $0x8] sm:$0xff] }
 0x191   : > { %488 = vmatpush.xpose.msrb.mxu2 %v912_v33  ;;  %508 = vmatpush.xpose.msrb.mxu3 %v914_v34 }
 0x195   : > { %489 = vmatpush.xpose.msrb.mxu2 %v908_v31  ;;  %509 = vmatpush.xpose.msrb.mxu3 %v910_v32 }
 0x199   : > { %490 = vmatpush.xpose.msrb.mxu2 %v904_v29  ;;  %510 = vmatpush.xpose.msrb.mxu3 %v906_v30 }
 0x19c   : > { %491 = vmatmul.f32.vlgmr.msrb.gmra.mxu2 %v473_v37  ;;  %511 = vmatmul.f32.vlgmr.msrb.gmra.mxu3 %v474_v35 }
 0x1df   : > { %v439_v33 = vpop.f32.mrf.mxu2  ;;  %v459_v31 = vpop.f32.mrf.mxu3 }
 0x1e0   : > { %v460_v34 = vadd.f32 %v459_v31, %v439_v33 }
 0x1e2   : > { %v462_v32 = vmax.f32 %v460_v34, 1e-24 }
 0x1e4   : > { %721 = vrsqrt.f32 %v462_v32  ;;  %vm469_vm2 = vweird.f32 %v462_v32 }
 0x1ea   : > { %v722_v29 = vpop.eup %721 }
 0x1eb   : > { %v464_v36 = vmul.f32 %v722_v29, %v462_v32  ;;  %vm470_vm3 = vweird.f32 %v722_v29 }
 0x1ec   : > { %vm471_vm4 = vmor %vm469_vm2, %vm470_vm3 }
 0x1ed   : > { %v465_v38 = vmul.f32 %v722_v29, %v464_v36 }
 0x1ef   : > { %v466_v30 = vmul.f32 0.5, %v465_v38 }
 0x1f1   : > { %v467_v39 = vsub.f32 1.5, %v466_v30 }
 0x1f3   : > { %v468_v40 = vmul.f32 %v722_v29, %v467_v39 }
 0x1f5   : > { %v472_v41 = vsel %vm471_vm4, %v722_v29, %v468_v40 }
 0x1f6   : > { %v515_v45 = vperm.slane %v472_v41, 0 }
 0x21f   : > { %v492_v42 = vpop.f32.mrf.mxu2  ;;  %v512_v43 = vpop.f32.mrf.mxu3 }
 0x220   : > { %v513_v44 = vadd.f32 %v512_v43, %v492_v42 }
 0x222   : > { %v516_v46 = vmul.f32 %v515_v45, %v513_v44 }
 0x224   : > { %517 = vst [vmem:[%s164_s17] sm:$0xff] %v516_v46 }
 0x225   : > { %750 = shalt.err (!%p747_p3)
}
 0x226   : > { %680 = dma.vmem_to_hbm [thread:$0]  (%p847_p5), %s532_s19, 128, %s534_s20, %s519_s24  }
 0x227 PF: > { %p686_p4 = scmp.ge.s32.totalorder %s785_s15, 2  ;;  %s545_s4 = sand.u32 1, %s773_s12  }
 0x228   : > { %s546_s5 = scalar_lea.sflag [#allocation3], %s545_s4 }
 0x229   : > { %p683_p7 = pnand %p686_p4, %p851_p6 }
 0x22b   : > { %p684_p8 = pneg %p683_p7 }
 0x22d   : > { %768 = dma.done.wait (%p684_p8), %s546_s5, 128  }
 0x22e   : > { %770 = vsyncadd (%p684_p8), %s546_s5, 4294967168  ;;  %p13_p9 = scmp.ge.s32.totalorder %s834_s18, 6   ;;  %s1108_s12 = smov %s777_s13 }
 0x22f   : > { %s1109_s13 = smov %s781_s14  ;;  %s1110_s14 = smov %s845_s21 }
 0x230   : > { %s1111_s15 = smov %s834_s18  ;;  %15 = sbr.rel (!%p13_p9) target bundleno = 3 (0x3), region = 67 }
 0x235   :  { %552 = vsyncpa [#allocation3], 1 }
 0x236   :  { %554 = vsyncpa [#allocation3 + $0x1], 1 }

</bundles_post_ra>
